<compile_context>
chip_gen: v7x
topology: tpu7x:2x2x1
jax: 0.10.0
libtpu: 0.0.40
codegen_flags: <defaults>
</compile_context>

<pallas_src>
import math
import functools

import jax
import jax.numpy as jnp
from jax.experimental import pallas as pl
from jax.experimental.pallas import tpu as pltpu


_MXU_DTYPE = jnp.bfloat16            # native MXU input dtype; accumulation stays f32


def _pick_vmem_limit():
    """~75% of physical VMEM (capped at 100 MiB); safe 32 MiB fallback."""
    try:
        info = pltpu.get_tpu_info()
        cap = int(getattr(info, "vmem_capacity_bytes", 0) or 0)
        if cap > 0:
            return int(min((cap * 3) // 4, 100 * 1024 * 1024))
    except Exception:
        pass
    return 32 * 1024 * 1024


_VMEM_LIMIT = _pick_vmem_limit()


def _pick_tile(dim, candidates):
    """Largest candidate that exactly divides `dim`, else the full dim.

    Exact division means no padding of inputs and no slicing of outputs;
    returning the full dim is always layout-legal (block dim == array dim).
    """
    for c in candidates:
        if dim >= c and dim % c == 0:
            return c
    return dim


# ----------------------------------------------------------------------------
# Kernel 1: tiled dense linear layer  y = x @ W^T + b
#   W stays in PyTorch (out_features, in_features) layout and is contracted on
#   its last axis inside the kernel (no wrapper-side transpose / relayout).
#   x and W are bf16 in HBM; accumulation is f32 on the MXU.
# ----------------------------------------------------------------------------
def _linear_kernel(x_ref, w_ref, b_ref, o_ref, *acc_scratch):
    # x_ref: (tm, tk) bf16, w_ref: (tn, tk) bf16, b_ref: (1, tn) f32,
    # o_ref: (tm, tn) out dtype.  acc_scratch: optional (tm, tn) f32 VMEM.
    acc_ref = acc_scratch[0] if acc_scratch else o_ref
    k = pl.program_id(2)

    partial = jax.lax.dot_general(
        x_ref[...], w_ref[...],
        dimension_numbers=(((1,), (1,)), ((), ())),      # contract both last axes
        preferred_element_type=jnp.float32)

    @pl.when(k == 0)
    def _():
        acc_ref[...] = (partial + b_ref[...]).astype(acc_ref.dtype)

    @pl.when(k != 0)
    def _():
        acc_ref[...] = (acc_ref[...] + partial).astype(acc_ref.dtype)

    if acc_scratch:                                      # bf16 output, multi-K-step
        @pl.when(k == pl.num_programs(2) - 1)
        def _():
            o_ref[...] = acc_ref[...].astype(o_ref.dtype)


def pallas_linear(x2d, w, bias2d, out_dtype):
    """x2d: (M, K) bf16, w: (N, K) bf16 (PyTorch layout), bias2d: (1, N) f32."""
    M, K = x2d.shape
    N, Kw = w.shape
    assert K == Kw and bias2d.shape == (1, N)

    tm = _pick_tile(M, (512, 256, 128, 64, 32, 16, 8))
    tk = _pick_tile(K, (512, 256, 128))
    tn = _pick_tile(N, (512, 256, 128))
    grid = (M // tm, N // tn, K // tk)
    nk = grid[2]

    # Only need a separate f32 accumulator when K is split AND the output is
    # narrower than f32 (otherwise we accumulate directly into the resident
    # output block).
    needs_scratch = (nk > 1) and (jnp.dtype(out_dtype) != jnp.dtype(jnp.float32))
    scratch = [pltpu.VMEM((tm, tn), jnp.float32)] if needs_scratch else []

    cost = pl.CostEstimate(
        flops=2 * M * K * N,
        transcendentals=0,
        bytes_accessed=(x2d.dtype.itemsize * M * K + w.dtype.itemsize * K * N
                        + jnp.dtype(out_dtype).itemsize * M * N + 4 * N))

    return pl.pallas_call(
        _linear_kernel,
        out_shape=jax.ShapeDtypeStruct((M, N), out_dtype),
        grid=grid,
        in_specs=[
            pl.BlockSpec((tm, tk), lambda i, j, k: (i, k)),
            pl.BlockSpec((tn, tk), lambda i, j, k: (j, k)),
            pl.BlockSpec((1, tn), lambda i, j, k: (0, j)),
        ],
        out_specs=pl.BlockSpec((tm, tn), lambda i, j, k: (i, j)),
        scratch_shapes=scratch,
        compiler_params=pltpu.CompilerParams(
            dimension_semantics=("parallel", "parallel", "arbitrary"),
            vmem_limit_bytes=_VMEM_LIMIT),
        cost_estimate=cost,
    )(x2d, w, bias2d)


# ----------------------------------------------------------------------------
# Kernel 2: fused multi-head attention on the packed [q | k | v] projection.
#   One grid step = one batch element, all heads.  Heads are read via static
#   ref slices and written head-by-head straight into the merged (S, E) output
#   layout (no concat, no HBM transposes).
# ----------------------------------------------------------------------------
def _attention_kernel(qkv_ref, o_ref, *, n_heads, d_head, causal):
    # qkv_ref: (1, S, 3*E) bf16 with E = n_heads * d_head;  o_ref: (1, S, E) bf16
    S = qkv_ref.shape[1]
    E = n_heads * d_head

    # The reference divides by sqrt(d_head) twice -> total 1/d_head, folded into
    # a single pre-scale of the small (S, d_head) q tile.  (Exact in bf16 for
    # power-of-two d_head; otherwise well below bf16 matmul noise.)
    scale = 1.0 / d_head

    if causal:
        row = jax.lax.broadcasted_iota(jnp.int32, (S, S), 0)
        col = jax.lax.broadcasted_iota(jnp.int32, (S, S), 1)
        masked = col > row            # bool upper triangle (diag never masked)

    for h in range(n_heads):
        q = qkv_ref[0, :, h * d_head:(h + 1) * d_head] * scale           # (S, Dh) bf16
        k = qkv_ref[0, :, E + h * d_head:E + (h + 1) * d_head]           # (S, Dh) bf16
        v = qkv_ref[0, :, 2 * E + h * d_head:2 * E + (h + 1) * d_head]   # (S, Dh) bf16

        # q @ k^T without materializing a transposed k relayout.
        s = jax.lax.dot_general(
            q, k,
            dimension_numbers=(((1,), (1,)), ((), ())),
            preferred_element_type=jnp.float32)                           # (S, S) f32
        if causal:
            s = jnp.where(masked, jnp.float32(-jnp.inf), s)

        # Numerically-stable softmax in f32 (portable across v5e/v6e/v7x).
        m = jnp.max(s, axis=-1, keepdims=True)
        p = jnp.exp(s - m)
        denom = jnp.sum(p, axis=-1, keepdims=True)                        # (S, 1) f32

        head = jax.lax.dot_general(
            p.astype(qkv_ref.dtype), v,
            dimension_numbers=(((1,), (0,)), ((), ())),
            preferred_element_type=jnp.float32)                           # (S, Dh) f32
        # Normalize AFTER the PV matmul: S*Dh multiplies instead of S^2.
        head = head * pl.reciprocal(denom, approx=True)                   # EUP slot

        o_ref[0, :, h * d_head:(h + 1) * d_head] = head.astype(o_ref.dtype)


def pallas_attention(qkv, n_heads, d_head, causal):
    """qkv: (B, S, 3*E) bf16 packed [q | k | v]  ->  (B, S, E) bf16."""
    B, S, threeE = qkv.shape
    E = n_heads * d_head
    assert threeE == 3 * E

    kernel = functools.partial(
        _attention_kernel, n_heads=n_heads, d_head=d_head, causal=causal)

    cost = pl.CostEstimate(
        flops=B * n_heads * (4 * S * S * d_head + 6 * S * S),
        transcendentals=B * n_heads * S * S,
        bytes_accessed=qkv.dtype.itemsize * (B * S * threeE + B * S * E))

    return pl.pallas_call(
        kernel,
        out_shape=jax.ShapeDtypeStruct((B, S, E), qkv.dtype),
        grid=(B,),
        in_specs=[pl.BlockSpec((1, S, threeE), lambda b: (b, 0, 0))],
        out_specs=pl.BlockSpec((1, S, E), lambda b: (b, 0, 0)),
        compiler_params=pltpu.CompilerParams(
            dimension_semantics=("parallel",),
            vmem_limit_bytes=_VMEM_LIMIT),
        cost_estimate=cost,
    )(qkv)


# ----------------------------------------------------------------------------
# Full SelfAttention forward (no head split/merge transposes in the wrapper)
# ----------------------------------------------------------------------------
def prepare_params(params):
    """One-time parameter prep: weights -> bf16 (MXU dtype), biases -> (1, N) f32.

    Done once outside the jitted forward so no per-call cast / pad / relayout
    passes over the weights.
    """
    return {
        "in_proj_w": params["in_proj_w"].astype(_MXU_DTYPE),     # (3E, E)
        "in_proj_b": params["in_proj_b"].reshape(1, -1).astype(jnp.float32),
        "out_proj_w": params["out_proj_w"].astype(_MXU_DTYPE),   # (E, E)
        "out_proj_b": params["out_proj_b"].reshape(1, -1).astype(jnp.float32),
    }


def self_attention_forward(x, prepared, n_heads, causal_mask=False):
    """x: (B, S, E) f32 -> (B, S, E) f32."""
    B, S, E = x.shape
    d_head = E // n_heads

    xb = x.astype(_MXU_DTYPE)            # single cast at the module boundary

    # in_proj: (B*S, E) @ (3E, E)^T + b  -> packed (B, S, 3E) bf16
    qkv = pallas_linear(xb.reshape(B * S, E), prepared["in_proj_w"],
                        prepared["in_proj_b"], out_dtype=_MXU_DTYPE)
    qkv = qkv.reshape(B, S, 3 * E)

    # fused multi-head attention on the packed layout -> (B, S, E) bf16
    attn = pallas_attention(qkv, n_heads, d_head, causal_mask)

    # out_proj -> f32 final output
    out = pallas_linear(attn.reshape(B * S, E), prepared["out_proj_w"],
                        prepared["out_proj_b"], out_dtype=jnp.float32)
    return out.reshape(B, S, E)


# ----------------------------------------------------------------------------
# Deterministic parameter init, pure-JAX reference, demo
# ----------------------------------------------------------------------------
def init_params(key, d_embed):
    k1, k2, k3, k4 = jax.random.split(key, 4)
    s = 1.0 / math.sqrt(d_embed)
    return {
        "in_proj_w": jax.random.uniform(k1, (3 * d_embed, d_embed), jnp.float32, -s, s),
        "in_proj_b": jax.random.uniform(k2, (3 * d_embed,), jnp.float32, -s, s),
        "out_proj_w": jax.random.uniform(k3, (d_embed, d_embed), jnp.float32, -s, s),
        "out_proj_b": jax.random.uniform(k4, (d_embed,), jnp.float32, -s, s),
    }


def _reference_forward(x, params, n_heads, causal_mask=False):
    """Pure-JAX f32 replica of the PyTorch module (incl. the double division)."""
    B, S, E = x.shape
    d_head = E // n_heads
    qkv = x @ params["in_proj_w"].T + params["in_proj_b"]
    q, k, v = jnp.split(qkv, 3, axis=-1)
    q = q.reshape(B, S, n_heads, d_head).transpose(0, 2, 1, 3)
    k = k.reshape(B, S, n_heads, d_head).transpose(0, 2, 1, 3)
    v = v.reshape(B, S, n_heads, d_head).transpose(0, 2, 1, 3)
    w = jnp.einsum("bhqd,bhkd->bhqk", q, k) / math.sqrt(d_head)
    if causal_mask:
        mask = jnp.triu(jnp.ones((S, S), dtype=bool), k=1)
        w = jnp.where(mask, -jnp.inf, w)
    w = w / math.sqrt(d_head)
    w = jax.nn.softmax(w, axis=-1)
    out = jnp.einsum("bhqk,bhkd->bhqd", w, v)
    out = out.transpose(0, 2, 1, 3).reshape(B, S, E)
    return out @ params["out_proj_w"].T + params["out_proj_b"]


if __name__ == "__main__":
    B, S, E, H = 2, 8, 32, 4   # batch, seq, d_embed, n_heads  (d_head = 8)

    key = jax.random.PRNGKey(0)
    kx, kp = jax.random.split(key)
    x = jax.random.normal(kx, (B, S, E), dtype=jnp.float32)
    params = init_params(kp, E)
    prepared = prepare_params(params)   # one-time bf16 cast / bias reshape

    fwd = jax.jit(functools.partial(self_attention_forward,
                                    n_heads=H, causal_mask=False))
    fwd_causal = jax.jit(functools.partial(self_attention_forward,
                                           n_heads=H, causal_mask=True))

    out = fwd(x, prepared)
    out_c = fwd_causal(x, prepared)
    jax.block_until_ready((out, out_c))

    assert out.shape == (B, S, E) and out_c.shape == (B, S, E)
    assert bool(jnp.all(jnp.isfinite(out))) and bool(jnp.all(jnp.isfinite(out_c)))

    # Validate against the f32 reference (bf16 MXU path: loose tolerance).
    ref = _reference_forward(x, params, H, False)
    ref_c = _reference_forward(x, params, H, True)
    assert float(jnp.max(jnp.abs(out - ref))) < 7.5e-2
    assert float(jnp.max(jnp.abs(out_c - ref_c))) < 7.5e-2

    print("KERNEL_OK")
</pallas_src>

<mosaic_0001>
module attributes {stable_mosaic.version = 11 : i64} {
  func.func @_linear_kernel(%arg0: i32, %arg1: i32, %arg2: i32, %arg3: memref<16x32xbf16, #tpu.memory_space<vmem>>, %arg4: memref<96x32xbf16, #tpu.memory_space<vmem>>, %arg5: memref<1x96xf32, #tpu.memory_space<vmem>>, %arg6: memref<16x96xbf16, #tpu.memory_space<vmem>>) attributes {dimension_semantics = [#tpu.dimension_semantics<parallel>, #tpu.dimension_semantics<parallel>, #tpu.dimension_semantics<arbitrary>], iteration_bounds = array<i64: 1, 1, 1>, scalar_prefetch = 0 : i64, scratch_operands = 0 : i64, tpu.core_type = #tpu.core_type<tc>, window_params = [{transform_indices = @transform_0, window_bounds = array<i64: 16, 32>}, {transform_indices = @transform_1, window_bounds = array<i64: 96, 32>}, {transform_indices = @transform_2, window_bounds = array<i64: 1, 96>}, {transform_indices = @transform_3, window_bounds = array<i64: 16, 96>}]} {
    %c0 = arith.constant 0 : index
    %c0_0 = arith.constant 0 : index
    %0 = vector.load %arg3[%c0, %c0_0] : memref<16x32xbf16, #tpu.memory_space<vmem>>, vector<16x32xbf16>
    %c0_1 = arith.constant 0 : index
    %c0_2 = arith.constant 0 : index
    %1 = vector.load %arg4[%c0_1, %c0_2] : memref<96x32xbf16, #tpu.memory_space<vmem>>, vector<96x32xbf16>
    %cst = arith.constant dense<0.000000e+00> : vector<16x96xf32>
    %2 = tpu.matmul %0, %1, %cst {dimension_numbers = #tpu.dot_dimension_numbers<[1], [1], [0], [0], [0, 0, 1, 0], [], []>} : vector<16x32xbf16>, vector<96x32xbf16>, vector<16x96xf32> -> vector<16x96xf32>
    %c0_i32 = arith.constant 0 : i32
    %3 = arith.cmpi eq, %arg2, %c0_i32 : i32
    %4 = arith.extui %3 : i1 to i32
    %c0_i32_3 = arith.constant 0 : i32
    %5 = arith.cmpi ne, %4, %c0_i32_3 : i32
    scf.if %5 {
      %c0_6 = arith.constant 0 : index
      %c0_7 = arith.constant 0 : index
      %9 = vector.load %arg5[%c0_6, %c0_7] : memref<1x96xf32, #tpu.memory_space<vmem>>, vector<1x96xf32>
      %10 = vector.broadcast %9 : vector<1x96xf32> to vector<16x96xf32>
      %11 = arith.addf %2, %10 : vector<16x96xf32>
      %12 = arith.truncf %11 : vector<16x96xf32> to vector<16x96xbf16>
      %c0_8 = arith.constant 0 : index
      %c0_9 = arith.constant 0 : index
      %13 = vector.load %arg6[%c0_8, %c0_9] : memref<16x96xbf16, #tpu.memory_space<vmem>>, vector<16x96xbf16>
      tpu.vector_store %arg6[%c0_8, %c0_9], %12 {strides = array<i32>} : memref<16x96xbf16, #tpu.memory_space<vmem>>, vector<16x96xbf16>,
    } else {
    }
    %c0_i32_4 = arith.constant 0 : i32
    %6 = arith.cmpi ne, %arg2, %c0_i32_4 : i32
    %7 = arith.extui %6 : i1 to i32
    %c0_i32_5 = arith.constant 0 : i32
    %8 = arith.cmpi ne, %7, %c0_i32_5 : i32
    scf.if %8 {
      %c0_6 = arith.constant 0 : index
      %c0_7 = arith.constant 0 : index
      %9 = vector.load %arg6[%c0_6, %c0_7] : memref<16x96xbf16, #tpu.memory_space<vmem>>, vector<16x96xbf16>
      %10 = arith.extf %9 : vector<16x96xbf16> to vector<16x96xf32>
      %11 = arith.addf %10, %2 : vector<16x96xf32>
      %12 = arith.truncf %11 : vector<16x96xf32> to vector<16x96xbf16>
      %c0_8 = arith.constant 0 : index
      %c0_9 = arith.constant 0 : index
      %13 = vector.load %arg6[%c0_8, %c0_9] : memref<16x96xbf16, #tpu.memory_space<vmem>>, vector<16x96xbf16>
      tpu.vector_store %arg6[%c0_8, %c0_9], %12 {strides = array<i32>} : memref<16x96xbf16, #tpu.memory_space<vmem>>, vector<16x96xbf16>,
    } else {
    }
    return
  }
  func.func @transform_0(%arg0: i32, %arg1: i32, %arg2: i32) -> (i32, i32) {
    %c0_i32 = arith.constant 0 : i32
    return %arg0, %arg2 : i32, i32
  }
  func.func @transform_1(%arg0: i32, %arg1: i32, %arg2: i32) -> (i32, i32) {
    %c0_i32 = arith.constant 0 : i32
    return %arg1, %arg2 : i32, i32
  }
  func.func @transform_2(%arg0: i32, %arg1: i32, %arg2: i32) -> (i32, i32) {
    %c0_i32 = arith.constant 0 : i32
    %c0_i32_0 = arith.constant 0 : i32
    return %c0_i32, %arg1 : i32, i32
  }
  func.func @transform_3(%arg0: i32, %arg1: i32, %arg2: i32) -> (i32, i32) {
    %c0_i32 = arith.constant 0 : i32
    return %arg0, %arg1 : i32, i32
  }
}

module attributes {stable_mosaic.version = 11 : i64} {
  func.func @_attention_kernel(%arg0: i32, %arg1: memref<1x8x96xbf16, #tpu.memory_space<vmem>>, %arg2: memref<1x8x32xbf16, #tpu.memory_space<vmem>>) attributes {dimension_semantics = [#tpu.dimension_semantics<parallel>], iteration_bounds = array<i64: 2>, scalar_prefetch = 0 : i64, scratch_operands = 0 : i64, tpu.core_type = #tpu.core_type<tc>, window_params = [{transform_indices = @transform_0, window_bounds = array<i64: 1, 8, 96>}, {transform_indices = @transform_1, window_bounds = array<i64: 1, 8, 32>}]} {
    %c0 = arith.constant 0 : index
    %c0_0 = arith.constant 0 : index
    %c0_1 = arith.constant 0 : index
    %0 = vector.load %arg1[%c0, %c0_0, %c0_1] : memref<1x8x96xbf16, #tpu.memory_space<vmem>>, vector<1x8x8xbf16>
    %1 = vector.shape_cast %0 : vector<1x8x8xbf16> to vector<8x8xbf16>
    %cst = arith.constant 1.250000e-01 : bf16
    %2 = vector.broadcast %cst : bf16 to vector<8x8xbf16>
    %3 = arith.mulf %1, %2 : vector<8x8xbf16>
    %c0_2 = arith.constant 0 : index
    %c0_3 = arith.constant 0 : index
    %c32 = arith.constant 32 : index
    %4 = vector.load %arg1[%c0_2, %c0_3, %c32] : memref<1x8x96xbf16, #tpu.memory_space<vmem>>, vector<1x8x8xbf16>
    %5 = vector.shape_cast %4 : vector<1x8x8xbf16> to vector<8x8xbf16>
    %c0_4 = arith.constant 0 : index
    %c0_5 = arith.constant 0 : index
    %c64 = arith.constant 64 : index
    %6 = vector.load %arg1[%c0_4, %c0_5, %c64] : memref<1x8x96xbf16, #tpu.memory_space<vmem>>, vector<1x8x8xbf16>
    %7 = vector.shape_cast %6 : vector<1x8x8xbf16> to vector<8x8xbf16>
    %cst_6 = arith.constant dense<0.000000e+00> : vector<8x8xf32>
    %8 = tpu.matmul %3, %5, %cst_6 {dimension_numbers = #tpu.dot_dimension_numbers<[1], [1], [0], [0], [0, 0, 1, 0], [], []>} : vector<8x8xbf16>, vector<8x8xbf16>, vector<8x8xf32> -> vector<8x8xf32>
    %cst_7 = arith.constant dense<0xFF800000> : vector<8xf32>
    %9 = vector.multi_reduction <maximumf>, %8, %cst_7 [1] : vector<8x8xf32> to vector<8xf32>
    %10 = vector.shape_cast %9 : vector<8xf32> to vector<8x1xf32>
    %11 = vector.broadcast %10 : vector<8x1xf32> to vector<8x8xf32>
    %12 = arith.subf %8, %11 : vector<8x8xf32>
    %13 = math.exp %12 : vector<8x8xf32>
    %cst_8 = arith.constant dense<0.000000e+00> : vector<8xf32>
    %14 = vector.multi_reduction <add>, %13, %cst_8 [1] : vector<8x8xf32> to vector<8xf32>
    %15 = vector.shape_cast %14 : vector<8xf32> to vector<8x1xf32>
    %16 = arith.truncf %13 : vector<8x8xf32> to vector<8x8xbf16>
    %cst_9 = arith.constant dense<0.000000e+00> : vector<8x8xf32>
    %17 = tpu.matmul %16, %7, %cst_9 {dimension_numbers = #tpu.dot_dimension_numbers<[1], [0], [0], [1], [0, 0, 1, 1], [], []>} : vector<8x8xbf16>, vector<8x8xbf16>, vector<8x8xf32> -> vector<8x8xf32>
    %18 = tpu.reciprocal %15 {approx = true} : vector<8x1xf32> -> vector<8x1xf32>
    %19 = vector.broadcast %18 : vector<8x1xf32> to vector<8x8xf32>
    %20 = arith.mulf %17, %19 : vector<8x8xf32>
    %21 = arith.truncf %20 : vector<8x8xf32> to vector<8x8xbf16>
    %c0_10 = arith.constant 0 : index
    %c0_11 = arith.constant 0 : index
    %c0_12 = arith.constant 0 : index
    %22 = vector.load %arg2[%c0_10, %c0_11, %c0_12] : memref<1x8x32xbf16, #tpu.memory_space<vmem>>, vector<1x8x8xbf16>
    %23 = vector.shape_cast %22 : vector<1x8x8xbf16> to vector<8x8xbf16>
    %24 = vector.shape_cast %21 : vector<8x8xbf16> to vector<1x8x8xbf16>
    tpu.vector_store %arg2[%c0_10, %c0_11, %c0_12], %24 {strides = array<i32>} : memref<1x8x32xbf16, #tpu.memory_space<vmem>>, vector<1x8x8xbf16>,
    %c0_13 = arith.constant 0 : index
    %c0_14 = arith.constant 0 : index
    %c8 = arith.constant 8 : index
    %25 = vector.load %arg1[%c0_13, %c0_14, %c8] : memref<1x8x96xbf16, #tpu.memory_space<vmem>>, vector<1x8x8xbf16>
    %26 = vector.shape_cast %25 : vector<1x8x8xbf16> to vector<8x8xbf16>
    %cst_15 = arith.constant 1.250000e-01 : bf16
    %27 = vector.broadcast %cst_15 : bf16 to vector<8x8xbf16>
    %28 = arith.mulf %26, %27 : vector<8x8xbf16>
    %c0_16 = arith.constant 0 : index
    %c0_17 = arith.constant 0 : index
    %c40 = arith.constant 40 : index
    %29 = vector.load %arg1[%c0_16, %c0_17, %c40] : memref<1x8x96xbf16, #tpu.memory_space<vmem>>, vector<1x8x8xbf16>
    %30 = vector.shape_cast %29 : vector<1x8x8xbf16> to vector<8x8xbf16>
    %c0_18 = arith.constant 0 : index
    %c0_19 = arith.constant 0 : index
    %c72 = arith.constant 72 : index
    %31 = vector.load %arg1[%c0_18, %c0_19, %c72] : memref<1x8x96xbf16, #tpu.memory_space<vmem>>, vector<1x8x8xbf16>
    %32 = vector.shape_cast %31 : vector<1x8x8xbf16> to vector<8x8xbf16>
    %cst_20 = arith.constant dense<0.000000e+00> : vector<8x8xf32>
    %33 = tpu.matmul %28, %30, %cst_20 {dimension_numbers = #tpu.dot_dimension_numbers<[1], [1], [0], [0], [0, 0, 1, 0], [], []>} : vector<8x8xbf16>, vector<8x8xbf16>, vector<8x8xf32> -> vector<8x8xf32>
    %cst_21 = arith.constant dense<0xFF800000> : vector<8xf32>
    %34 = vector.multi_reduction <maximumf>, %33, %cst_21 [1] : vector<8x8xf32> to vector<8xf32>
    %35 = vector.shape_cast %34 : vector<8xf32> to vector<8x1xf32>
    %36 = vector.broadcast %35 : vector<8x1xf32> to vector<8x8xf32>
    %37 = arith.subf %33, %36 : vector<8x8xf32>
    %38 = math.exp %37 : vector<8x8xf32>
    %cst_22 = arith.constant dense<0.000000e+00> : vector<8xf32>
    %39 = vector.multi_reduction <add>, %38, %cst_22 [1] : vector<8x8xf32> to vector<8xf32>
    %40 = vector.shape_cast %39 : vector<8xf32> to vector<8x1xf32>
    %41 = arith.truncf %38 : vector<8x8xf32> to vector<8x8xbf16>
    %cst_23 = arith.constant dense<0.000000e+00> : vector<8x8xf32>
    %42 = tpu.matmul %41, %32, %cst_23 {dimension_numbers = #tpu.dot_dimension_numbers<[1], [0], [0], [1], [0, 0, 1, 1], [], []>} : vector<8x8xbf16>, vector<8x8xbf16>, vector<8x8xf32> -> vector<8x8xf32>
    %43 = tpu.reciprocal %40 {approx = true} : vector<8x1xf32> -> vector<8x1xf32>
    %44 = vector.broadcast %43 : vector<8x1xf32> to vector<8x8xf32>
    %45 = arith.mulf %42, %44 : vector<8x8xf32>
    %46 = arith.truncf %45 : vector<8x8xf32> to vector<8x8xbf16>
    %c0_24 = arith.constant 0 : index
    %c0_25 = arith.constant 0 : index
    %c8_26 = arith.constant 8 : index
    %47 = vector.load %arg2[%c0_24, %c0_25, %c8_26] : memref<1x8x32xbf16, #tpu.memory_space<vmem>>, vector<1x8x8xbf16>
    %48 = vector.shape_cast %47 : vector<1x8x8xbf16> to vector<8x8xbf16>
    %49 = vector.shape_cast %46 : vector<8x8xbf16> to vector<1x8x8xbf16>
    tpu.vector_store %arg2[%c0_24, %c0_25, %c8_26], %49 {strides = array<i32>} : memref<1x8x32xbf16, #tpu.memory_space<vmem>>, vector<1x8x8xbf16>,
    %c0_27 = arith.constant 0 : index
    %c0_28 = arith.constant 0 : index
    %c16 = arith.constant 16 : index
    %50 = vector.load %arg1[%c0_27, %c0_28, %c16] : memref<1x8x96xbf16, #tpu.memory_space<vmem>>, vector<1x8x8xbf16>
    %51 = vector.shape_cast %50 : vector<1x8x8xbf16> to vector<8x8xbf16>
    %cst_29 = arith.constant 1.250000e-01 : bf16
    %52 = vector.broadcast %cst_29 : bf16 to vector<8x8xbf16>
    %53 = arith.mulf %51, %52 : vector<8x8xbf16>
    %c0_30 = arith.constant 0 : index
    %c0_31 = arith.constant 0 : index
    %c48 = arith.constant 48 : index
    %54 = vector.load %arg1[%c0_30, %c0_31, %c48] : memref<1x8x96xbf16, #tpu.memory_space<vmem>>, vector<1x8x8xbf16>
    %55 = vector.shape_cast %54 : vector<1x8x8xbf16> to vector<8x8xbf16>
    %c0_32 = arith.constant 0 : index
    %c0_33 = arith.constant 0 : index
    %c80 = arith.constant 80 : index
    %56 = vector.load %arg1[%c0_32, %c0_33, %c80] : memref<1x8x96xbf16, #tpu.memory_space<vmem>>, vector<1x8x8xbf16>
    %57 = vector.shape_cast %56 : vector<1x8x8xbf16> to vector<8x8xbf16>
    %cst_34 = arith.constant dense<0.000000e+00> : vector<8x8xf32>
    %58 = tpu.matmul %53, %55, %cst_34 {dimension_numbers = #tpu.dot_dimension_numbers<[1], [1], [0], [0], [0, 0, 1, 0], [], []>} : vector<8x8xbf16>, vector<8x8xbf16>, vector<8x8xf32> -> vector<8x8xf32>
    %cst_35 = arith.constant dense<0xFF800000> : vector<8xf32>
    %59 = vector.multi_reduction <maximumf>, %58, %cst_35 [1] : vector<8x8xf32> to vector<8xf32>
    %60 = vector.shape_cast %59 : vector<8xf32> to vector<8x1xf32>
    %61 = vector.broadcast %60 : vector<8x1xf32> to vector<8x8xf32>
    %62 = arith.subf %58, %61 : vector<8x8xf32>
    %63 = math.exp %62 : vector<8x8xf32>
    %cst_36 = arith.constant dense<0.000000e+00> : vector<8xf32>
    %64 = vector.multi_reduction <add>, %63, %cst_36 [1] : vector<8x8xf32> to vector<8xf32>
    %65 = vector.shape_cast %64 : vector<8xf32> to vector<8x1xf32>
    %66 = arith.truncf %63 : vector<8x8xf32> to vector<8x8xbf16>
    %cst_37 = arith.constant dense<0.000000e+00> : vector<8x8xf32>
    %67 = tpu.matmul %66, %57, %cst_37 {dimension_numbers = #tpu.dot_dimension_numbers<[1], [0], [0], [1], [0, 0, 1, 1], [], []>} : vector<8x8xbf16>, vector<8x8xbf16>, vector<8x8xf32> -> vector<8x8xf32>
    %68 = tpu.reciprocal %65 {approx = true} : vector<8x1xf32> -> vector<8x1xf32>
    %69 = vector.broadcast %68 : vector<8x1xf32> to vector<8x8xf32>
    %70 = arith.mulf %67, %69 : vector<8x8xf32>
    %71 = arith.truncf %70 : vector<8x8xf32> to vector<8x8xbf16>
    %c0_38 = arith.constant 0 : index
    %c0_39 = arith.constant 0 : index
    %c16_40 = arith.constant 16 : index
    %72 = vector.load %arg2[%c0_38, %c0_39, %c16_40] : memref<1x8x32xbf16, #tpu.memory_space<vmem>>, vector<1x8x8xbf16>
    %73 = vector.shape_cast %72 : vector<1x8x8xbf16> to vector<8x8xbf16>
    %74 = vector.shape_cast %71 : vector<8x8xbf16> to vector<1x8x8xbf16>
    tpu.vector_store %arg2[%c0_38, %c0_39, %c16_40], %74 {strides = array<i32>} : memref<1x8x32xbf16, #tpu.memory_space<vmem>>, vector<1x8x8xbf16>,
    %c0_41 = arith.constant 0 : index
    %c0_42 = arith.constant 0 : index
    %c24 = arith.constant 24 : index
    %75 = vector.load %arg1[%c0_41, %c0_42, %c24] : memref<1x8x96xbf16, #tpu.memory_space<vmem>>, vector<1x8x8xbf16>
    %76 = vector.shape_cast %75 : vector<1x8x8xbf16> to vector<8x8xbf16>
    %cst_43 = arith.constant 1.250000e-01 : bf16
    %77 = vector.broadcast %cst_43 : bf16 to vector<8x8xbf16>
    %78 = arith.mulf %76, %77 : vector<8x8xbf16>
    %c0_44 = arith.constant 0 : index
    %c0_45 = arith.constant 0 : index
    %c56 = arith.constant 56 : index
    %79 = vector.load %arg1[%c0_44, %c0_45, %c56] : memref<1x8x96xbf16, #tpu.memory_space<vmem>>, vector<1x8x8xbf16>
    %80 = vector.shape_cast %79 : vector<1x8x8xbf16> to vector<8x8xbf16>
    %c0_46 = arith.constant 0 : index
    %c0_47 = arith.constant 0 : index
    %c88 = arith.constant 88 : index
    %81 = vector.load %arg1[%c0_46, %c0_47, %c88] : memref<1x8x96xbf16, #tpu.memory_space<vmem>>, vector<1x8x8xbf16>
    %82 = vector.shape_cast %81 : vector<1x8x8xbf16> to vector<8x8xbf16>
    %cst_48 = arith.constant dense<0.000000e+00> : vector<8x8xf32>
    %83 = tpu.matmul %78, %80, %cst_48 {dimension_numbers = #tpu.dot_dimension_numbers<[1], [1], [0], [0], [0, 0, 1, 0], [], []>} : vector<8x8xbf16>, vector<8x8xbf16>, vector<8x8xf32> -> vector<8x8xf32>
    %cst_49 = arith.constant dense<0xFF800000> : vector<8xf32>
    %84 = vector.multi_reduction <maximumf>, %83, %cst_49 [1] : vector<8x8xf32> to vector<8xf32>
    %85 = vector.shape_cast %84 : vector<8xf32> to vector<8x1xf32>
    %86 = vector.broadcast %85 : vector<8x1xf32> to vector<8x8xf32>
    %87 = arith.subf %83, %86 : vector<8x8xf32>
    %88 = math.exp %87 : vector<8x8xf32>
    %cst_50 = arith.constant dense<0.000000e+00> : vector<8xf32>
    %89 = vector.multi_reduction <add>, %88, %cst_50 [1] : vector<8x8xf32> to vector<8xf32>
    %90 = vector.shape_cast %89 : vector<8xf32> to vector<8x1xf32>
    %91 = arith.truncf %88 : vector<8x8xf32> to vector<8x8xbf16>
    %cst_51 = arith.constant dense<0.000000e+00> : vector<8x8xf32>
    %92 = tpu.matmul %91, %82, %cst_51 {dimension_numbers = #tpu.dot_dimension_numbers<[1], [0], [0], [1], [0, 0, 1, 1], [], []>} : vector<8x8xbf16>, vector<8x8xbf16>, vector<8x8xf32> -> vector<8x8xf32>
    %93 = tpu.reciprocal %90 {approx = true} : vector<8x1xf32> -> vector<8x1xf32>
    %94 = vector.broadcast %93 : vector<8x1xf32> to vector<8x8xf32>
    %95 = arith.mulf %92, %94 : vector<8x8xf32>
    %96 = arith.truncf %95 : vector<8x8xf32> to vector<8x8xbf16>
    %c0_52 = arith.constant 0 : index
    %c0_53 = arith.constant 0 : index
    %c24_54 = arith.constant 24 : index
    %97 = vector.load %arg2[%c0_52, %c0_53, %c24_54] : memref<1x8x32xbf16, #tpu.memory_space<vmem>>, vector<1x8x8xbf16>
    %98 = vector.shape_cast %97 : vector<1x8x8xbf16> to vector<8x8xbf16>
    %99 = vector.shape_cast %96 : vector<8x8xbf16> to vector<1x8x8xbf16>
    tpu.vector_store %arg2[%c0_52, %c0_53, %c24_54], %99 {strides = array<i32>} : memref<1x8x32xbf16, #tpu.memory_space<vmem>>, vector<1x8x8xbf16>,
    return
  }
  func.func @transform_0(%arg0: i32) -> (i32, i32, i32) {
    %c0_i32 = arith.constant 0 : i32
    %c0_i32_0 = arith.constant 0 : i32
    %c0_i32_1 = arith.constant 0 : i32
    return %arg0, %c0_i32, %c0_i32_0 : i32, i32, i32
  }
  func.func @transform_1(%arg0: i32) -> (i32, i32, i32) {
    %c0_i32 = arith.constant 0 : i32
    %c0_i32_0 = arith.constant 0 : i32
    %c0_i32_1 = arith.constant 0 : i32
    return %arg0, %c0_i32, %c0_i32_0 : i32, i32, i32
  }
}

module attributes {stable_mosaic.version = 11 : i64} {
  func.func @_linear_kernel(%arg0: i32, %arg1: i32, %arg2: i32, %arg3: memref<16x32xbf16, #tpu.memory_space<vmem>>, %arg4: memref<32x32xbf16, #tpu.memory_space<vmem>>, %arg5: memref<1x32xf32, #tpu.memory_space<vmem>>, %arg6: memref<16x32xf32, #tpu.memory_space<vmem>>) attributes {dimension_semantics = [#tpu.dimension_semantics<parallel>, #tpu.dimension_semantics<parallel>, #tpu.dimension_semantics<arbitrary>], iteration_bounds = array<i64: 1, 1, 1>, scalar_prefetch = 0 : i64, scratch_operands = 0 : i64, tpu.core_type = #tpu.core_type<tc>, window_params = [{transform_indices = @transform_0, window_bounds = array<i64: 16, 32>}, {transform_indices = @transform_1, window_bounds = array<i64: 32, 32>}, {transform_indices = @transform_2, window_bounds = array<i64: 1, 32>}, {transform_indices = @transform_3, window_bounds = array<i64: 16, 32>}]} {
    %c0 = arith.constant 0 : index
    %c0_0 = arith.constant 0 : index
    %0 = vector.load %arg3[%c0, %c0_0] : memref<16x32xbf16, #tpu.memory_space<vmem>>, vector<16x32xbf16>
    %c0_1 = arith.constant 0 : index
    %c0_2 = arith.constant 0 : index
    %1 = vector.load %arg4[%c0_1, %c0_2] : memref<32x32xbf16, #tpu.memory_space<vmem>>, vector<32x32xbf16>
    %cst = arith.constant dense<0.000000e+00> : vector<16x32xf32>
    %2 = tpu.matmul %0, %1, %cst {dimension_numbers = #tpu.dot_dimension_numbers<[1], [1], [0], [0], [0, 0, 1, 0], [], []>} : vector<16x32xbf16>, vector<32x32xbf16>, vector<16x32xf32> -> vector<16x32xf32>
    %c0_i32 = arith.constant 0 : i32
    %3 = arith.cmpi eq, %arg2, %c0_i32 : i32
    %4 = arith.extui %3 : i1 to i32
    %c0_i32_3 = arith.constant 0 : i32
    %5 = arith.cmpi ne, %4, %c0_i32_3 : i32
    scf.if %5 {
      %c0_6 = arith.constant 0 : index
      %c0_7 = arith.constant 0 : index
      %9 = vector.load %arg5[%c0_6, %c0_7] : memref<1x32xf32, #tpu.memory_space<vmem>>, vector<1x32xf32>
      %10 = vector.broadcast %9 : vector<1x32xf32> to vector<16x32xf32>
      %11 = arith.addf %2, %10 : vector<16x32xf32>
      %c0_8 = arith.constant 0 : index
      %c0_9 = arith.constant 0 : index
      %12 = vector.load %arg6[%c0_8, %c0_9] : memref<16x32xf32, #tpu.memory_space<vmem>>, vector<16x32xf32>
      tpu.vector_store %arg6[%c0_8, %c0_9], %11 {strides = array<i32>} : memref<16x32xf32, #tpu.memory_space<vmem>>, vector<16x32xf32>,
    } else {
    }
    %c0_i32_4 = arith.constant 0 : i32
    %6 = arith.cmpi ne, %arg2, %c0_i32_4 : i32
    %7 = arith.extui %6 : i1 to i32
    %c0_i32_5 = arith.constant 0 : i32
    %8 = arith.cmpi ne, %7, %c0_i32_5 : i32
    scf.if %8 {
      %c0_6 = arith.constant 0 : index
      %c0_7 = arith.constant 0 : index
      %9 = vector.load %arg6[%c0_6, %c0_7] : memref<16x32xf32, #tpu.memory_space<vmem>>, vector<16x32xf32>
      %10 = arith.addf %9, %2 : vector<16x32xf32>
      %c0_8 = arith.constant 0 : index
      %c0_9 = arith.constant 0 : index
      %11 = vector.load %arg6[%c0_8, %c0_9] : memref<16x32xf32, #tpu.memory_space<vmem>>, vector<16x32xf32>
      tpu.vector_store %arg6[%c0_8, %c0_9], %10 {strides = array<i32>} : memref<16x32xf32, #tpu.memory_space<vmem>>, vector<16x32xf32>,
    } else {
    }
    return
  }
  func.func @transform_0(%arg0: i32, %arg1: i32, %arg2: i32) -> (i32, i32) {
    %c0_i32 = arith.constant 0 : i32
    return %arg0, %arg2 : i32, i32
  }
  func.func @transform_1(%arg0: i32, %arg1: i32, %arg2: i32) -> (i32, i32) {
    %c0_i32 = arith.constant 0 : i32
    return %arg1, %arg2 : i32, i32
  }
  func.func @transform_2(%arg0: i32, %arg1: i32, %arg2: i32) -> (i32, i32) {
    %c0_i32 = arith.constant 0 : i32
    %c0_i32_0 = arith.constant 0 : i32
    return %c0_i32, %arg1 : i32, i32
  }
  func.func @transform_3(%arg0: i32, %arg1: i32, %arg2: i32) -> (i32, i32) {
    %c0_i32 = arith.constant 0 : i32
    return %arg0, %arg1 : i32, i32
  }
}

</mosaic_0001>

<bundles_post_ra>
// kernel: self_attention_forward.3
= control target key start
LH: loop header
LB: loop body
LE: loop exit
PB: predicated region body
PF: predicated region fallthrough
CT: control target
= control target key end

     0   :  { %vm64_vm0 = vcmask 261120   ;;  %v225_v0 = vmov 0.0   ;;  %vm226_vm1 = vmmov 0   ;;  %vm148_vm2 = vcmask 781312   ;;  %s284_s1 = inlined_call_operand.vmem [shape: bf16[96,32], index: 1, kind: input, shape index: {}]   ;;  %s285_s0 = inlined_call_operand.vmem [shape: bf16[16,32], index: 0, kind: input, shape index: {}]   ;;  %s286_s2 = inlined_call_operand.vmem [shape: f32[1,96], index: 2, kind: input, shape index: {}]   ;;  %s287_s3 = inlined_call_operand.vmem [shape: bf16[16,96], index: 3, kind: output, shape index: {}]  }
   0x1   :  { %200 = vmatprep.subr.bf16.mxu0 %v225_v0  ;;  %v218_v1 = vld [vmem:[%s284_s1] sm:$0xff]   ;;  %212 = vmatprep.mubr.msk.bf16.mxu0 %vm226_vm1, %v225_v0  ;;  %v219_v3 = vld [vmem:[%s284_s1 + $0x8] sm:$0xff]   ;;  %v220_v5 = vld [vmem:[%s284_s1 + $0x10] sm:$0xff]  }
   0x2   :  { %v69_v2 = vsel %vm64_vm0, %v218_v1, 0  ;;  %v72_v4 = vsel %vm64_vm0, %v219_v3, 0  ;;  %v75_v6 = vsel %vm64_vm0, %v220_v5, 0  ;;  %v221_v7 = vld [vmem:[%s284_s1 + $0x18] sm:$0xff]   ;;  %v222_v9 = vld [vmem:[%s284_s1 + $0x20] sm:$0xff]   ;;  %v223_v11 = vld [vmem:[%s284_s1 + $0x28] sm:$0xff]  }
   0x3   :  { %201 = vmatpush3.bf16.xpose.msra.mxu0 %v69_v2  ;;  %v78_v8 = vsel %vm64_vm0, %v221_v7, 0  ;;  %v81_v10 = vsel %vm64_vm0, %v222_v9, 0  ;;  %v84_v12 = vsel %vm64_vm0, %v223_v11, 0  ;;  %v224_v13 = vld [vmem:[%s285_s0] sm:$0xff]  }
   0x4   :  { %202 = vmatprep.subr.bf16.mxu0 %v225_v0  ;;  %v184_v14 = vld [vmem:[%s286_s2] ss:$0 sm:$0xff] }
   0xb   :  { %203 = vmatpush3.bf16.xpose.msra.mxu0 %v72_v4 }
   0xc   :  { %204 = vmatprep.subr.bf16.mxu0 %v225_v0 }
  0x13   :  { %205 = vmatpush3.bf16.xpose.msra.mxu0 %v75_v6 }
  0x14   :  { %206 = vmatprep.subr.bf16.mxu0 %v225_v0 }
  0x1b   :  { %207 = vmatpush3.bf16.xpose.msra.mxu0 %v78_v8 }
  0x1c   :  { %208 = vmatprep.subr.bf16.mxu0 %v225_v0 }
  0x23   :  { %209 = vmatpush3.bf16.xpose.msra.mxu0 %v81_v10 }
  0x24   :  { %210 = vmatprep.subr.bf16.mxu0 %v225_v0 }
  0x2b   :  { %211 = vmatpush3.bf16.xpose.msra.mxu0 %v84_v12 }
  0x32   :  { %213 = vmatmul.mubr.msk.bf16.vlgmr.msra.gmra.mrb[0].mxu0 %vm64_vm0, %v224_v13 }
 0x105   :  { %v120_v15 = vpop.f32.mrb[0].mxu0 }
 0x106   :  { %v138_v16 = vadd.f32 %v184_v14, %v120_v15  ;;  %v214_v17 = vpop.f32.mrb[1].mxu0 }
 0x107   :  { %v123_v18 = vpop.f32.mrb[2].mxu0 }
 0x108   :  { %v189_v19 = vpack.c.bf16 %v138_v16, %v138_v16  ;;  %v139_v20 = vadd.f32 %v184_v14, %v123_v18  ;;  %v215_v21 = vpop.f32.mrb[3].mxu0 }
 0x10a   :  { %149 = vst.msk [vmem:[%s287_s3] sm:$0xf] %vm148_vm2, %v189_v19  ;;  %v190_v22 = vpack.c.bf16 %v139_v20, %v139_v20 }
 0x10c   :  { %150 = vst.msk [vmem:[%s287_s3 + $0x4] sm:$0xf] %vm148_vm2, %v190_v22 }

// kernel: self_attention_forward.4
= control target key start
LH: loop header
LB: loop body
LE: loop exit
PB: predicated region body
PF: predicated region fallthrough
CT: control target
= control target key end

     0   :  { %s838_s6 = smov 0   ;;  %s932_s0 = inlined_call_operand.vmem [shape: bf16[2,8,96], index: 0, kind: input, shape index: {}]   ;;  %s933_s1 = inlined_call_operand.vmem [shape: bf16[2,8,32], index: 1, kind: output, shape index: {}]  }
   0x1 LB: > { %s666_s7 = sadd.s32 4294967295, %s810_s6   ;;  %p670_p0 = scmp.ge.s32.totalorder %s810_s6, 1  ;;  %s810_s6 = sphi %s838_s6, %s11_s6  }
   0x2   : > { %p86_p1 = scmp.lt.s32.totalorder %s810_s6, 3 }
   0x4   : > { %p87_p2 = pnand %p670_p0, %p86_p1 }
   0x5   : > { %p104_p3 = scmp.lt.s32.totalorder (!%p87_p2), %s666_s7, 1  ;;  %v812_v0 = vmov (!%p87_p2), 0.0   ;;  %vm813_vm0 = vmmov (!%p87_p2), 0   ;;  %s814_s12 = smov (!%p87_p2), 96   ;;  %vm121_vm1 = vcmask (!%p87_p2), 64512   ;;  %vm183_vm2 = vcmask (!%p87_p2), 1043456  }
   0x6   : > { %90 = sbr.rel (%p87_p2) target bundleno = 1242 (0x4da), region = 24  ;;  %712 = vmatprep.subr.bf16.mxu0 (!%p87_p2), %v812_v0  ;;  %714 = vmatprep.mubr.msk.bf16.mxu0 (!%p87_p2), %vm813_vm0, %v812_v0  ;;  %s815_s13 = smov (!%p87_p2), 64   ;;  %vm230_vm3 = vcmask (!%p87_p2), 60416   ;;  %vm357_vm4 = vcmask (!%p87_p2), 126016   ;;  %vm484_vm5 = vcmask (!%p87_p2), 191616   ;;  %vm611_vm6 = vcmask (!%p87_p2), 257216  }
   0x7   : > { %718 = vmatprep.subr.bf16.mxu1 (!%p87_p2), %v812_v0  ;;  %720 = vmatprep.mubr.msk.bf16.mxu1 (!%p87_p2), %vm813_vm0, %v812_v0  ;;  %s816_s14 = smov (!%p87_p2), 88   ;;  %s817_s15 = smov (!%p87_p2), 120  }
   0x8   : > { %s818_s16 = smov (!%p87_p2), 80   ;;  %s819_s17 = smov (!%p87_p2), 112  }
   0x9   : > { %s820_s18 = smov (!%p87_p2), 72   ;;  %s821_s19 = smov (!%p87_p2), 104  }
   0xa   : > { %s822_s20 = smov (!%p87_p2), 56   ;;  %s823_s21 = smov (!%p87_p2), 48  }
   0xb   : > { %s824_s22 = smov (!%p87_p2), 40   ;;  %s825_s26 = smov (!%p87_p2), 8  }
   0xc   : > { %s826_s27 = smov (!%p87_p2), 16   ;;  %s827_s28 = smov (!%p87_p2), 24  }
   0xd   : > { %s935_s7 = smov (!%p104_p3, %s666_s7), 1 }
   0xe   : > { %s671_s8 = sshll.u32 %s935_s7, 2 }
   0xf   : > { %s107_s11 = scalar_lea.vmem %s932_s0, %s671_s8  ;;  %s923_s25 = scalar_lea.vmem %s933_s1, %s671_s8 }
  0x10   : > { %v114_v1 = vld [vmem:[%s107_s11] sm:$0xf] }
  0x11   : > { %v673_v2 = vcombine.low %v114_v1, %v114_v1  ;;  %v115_v5 = vmul.bf16 1040203264, %v114_v1  ;;  %v232_v6 = vld [vmem:[%s107_s11] sm:$0xf] }
  0x12   : > { %v677_v7 = vcombine.low %v232_v6, %v232_v6  ;;  %v233_v8 = vmul.bf16 1040203264, %v232_v6  ;;  %v359_v10 = vld [vmem:[%s107_s11] sm:$0xf] }
  0x13   : > { %119 = vrot.lane.b32.xlu0 %v673_v2, %s814_s12  ;;  %178 = vrot.lane.b32.xlu1 %v673_v2, %s815_s13  ;;  %v865_v11 = vcombine.low %v359_v10, %v359_v10  ;;  %v360_v12 = vmul.bf16 1040203264, %v359_v10  ;;  %v486_v14 = vld [vmem:[%s107_s11] sm:$0xf] }
  0x14   : > { %v676_v9 = vcombine.low %v233_v8, %v233_v8  ;;  %v868_v15 = vcombine.low %v486_v14, %v486_v14  ;;  %v487_v16 = vmul.bf16 1040203264, %v486_v14 }
  0x15   : > { %v681_v13 = vcombine.low %v360_v12, %v360_v12 }
  0x16   : > { %v686_v17 = vcombine.low %v487_v16, %v487_v16 }
  0x17   : > { %242 = vrot.lane.b32.xlu1 %v677_v7, %s816_s14 }
  0x1b   : > { %237 = vrot.lane.b32.xlu1 %v676_v9, %s817_s15 }
  0x1f   : > { %369 = vrot.lane.b32.xlu1 %v865_v11, %s818_s16 }
  0x23   : > { %364 = vrot.lane.b32.xlu1 %v681_v13, %s819_s17 }
  0x27   : > { %496 = vrot.lane.b32.xlu1 %v868_v15, %s820_s18 }
  0x2b   : > { %491 = vrot.lane.b32.xlu1 %v686_v17, %s821_s19 }
  0x85   : > { %v120_v3 = vpop.permute.xlu0 %119  ;;  %v179_v23 = vpop.permute.xlu1 %178 }
  0x86   : > { %v126_v4 = vsel %vm121_vm1, %v120_v3, 0  ;;  %v185_v24 = vsel %vm183_vm2, %v179_v23, 0 }
  0x87   : > { %713 = vmatpush3.bf16.xpose.msra.mxu0 %v126_v4  ;;  %719 = vmatpush3.bf16.msra.mxu1 %v185_v24 }
  0x88   : > { %730 = vmatprep.subr.bf16.mxu0 %v812_v0  ;;  %724 = vmatprep.subr.bf16.mxu1 %v812_v0 }
  0x89   : > { %v243_v28 = vpop.permute.xlu1 %242 }
  0x8a   : > { %v248_v31 = vsel %vm121_vm1, %v243_v28, 0 }
  0x8d   : > { %v238_v29 = vpop.permute.xlu1 %237 }
  0x8e   : > { %715 = vmatmul.mubr.msk.bf16.vlgmr.msra.gmra.mrb[0].mxu0 %vm121_vm1, %v115_v5 }
  0x8f   : > { %732 = vmatprep.mubr.msk.bf16.mxu0 %vm813_vm0, %v812_v0 }
  0x91   : > { %v370_v33 = vpop.permute.xlu1 %369 }
  0x92   : > { %v375_v35 = vsel %vm121_vm1, %v370_v33, 0 }
  0x95   : > { %v365_v34 = vpop.permute.xlu1 %364 }
  0x99   : > { %v497_v36 = vpop.permute.xlu1 %496 }
  0x9a   : > { %v502_v37 = vsel %vm121_vm1, %v497_v36, 0 }
  0x9d   : > { %v492_v38 = vpop.permute.xlu1 %491 }
 0x161   : > { %v162_v18 = vpop.f32.mrb[0].mxu0 }
 0x162   : > { %v716_v19 = vpop.f32.mrb[1].mxu0  ;;  %v168_v20 = vsel %vm121_vm1, %v162_v18, -inf }
 0x163   : > { %169 = vmax.xlane.f32.xlu0 %v168_v20  ;;  %v165_v21 = vpop.f32.mrb[2].mxu0 }
 0x164   : > { %v717_v22 = vpop.f32.mrb[3].mxu0 }
 0x179   : > { %300 = vrot.lane.b32.xlu0 %v677_v7, %s822_s20 }
 0x1f0   : > { %v170_v25 = vpop.xlane.xlu0 %169 }
 0x1f1   : > { %v171_v26 = vsub.f32 %v162_v18, %v170_v25 }
 0x1f3   : > { %v172_v27 = vmul.f32 1.442695, %v171_v26 }
 0x1f4   : > { %v301_v39 = vpop.permute.xlu0 %300 }
 0x1f5   : > { %788 = vpow2.f32 %v172_v27  ;;  %v306_v40 = vsel %vm183_vm2, %v301_v39, 0 }
 0x1f6   : > { %731 = vmatpush3.bf16.msra.mxu0 %v306_v40 }
 0x1f7   : > { %742 = vmatprep.subr.bf16.mxu0 %v812_v0 }
 0x1ff   : > { %v874_v30 = vpop.eup %788 }
 0x200   : > { %v177_v32 = vpack.c.bf16 %v874_v30, %v874_v30  ;;  %v174_v19 = vsel %vm121_vm1, %v874_v30, 0.0 }
 0x202   : > { %721 = vmatmul.mubr.msk.bf16.vlgmr.msra.gmra.mrb[0].mxu1 %vm121_vm1, %v177_v32 }
 0x203   : > { %725 = vmatpush3.bf16.xpose.msra.mxu1 %v248_v31  ;;  %726 = vmatprep.mubr.msk.bf16.mxu1 %vm813_vm0, %v812_v0 }
 0x204   : > { %736 = vmatprep.subr.bf16.mxu1 %v812_v0 }
 0x20a   : > { %727 = vmatmul.mubr.msk.bf16.vlgmr.msra.gmra.mrb[4].mxu1 %vm121_vm1, %v238_v29 }
 0x20b   : > { %737 = vmatpush3.bf16.xpose.msra.mxu1 %v375_v35  ;;  %738 = vmatprep.mubr.msk.bf16.mxu1 %vm813_vm0, %v812_v0 }
 0x20c   : > { %748 = vmatprep.subr.bf16.mxu1 %v812_v0 }
 0x212   : > { %739 = vmatmul.mubr.msk.bf16.vlgmr.msra.gmra.mrb[8].mxu1 %vm121_vm1, %v365_v34 }
 0x213   : > { %749 = vmatpush3.bf16.xpose.msra.mxu1 %v502_v37  ;;  %750 = vmatprep.mubr.msk.bf16.mxu1 %vm813_vm0, %v812_v0 }
 0x21a   : > { %751 = vmatmul.mubr.msk.bf16.vlgmr.msra.gmra.mrb[12].mxu1 %vm121_vm1, %v492_v38 }
 0x2d5   : > { %v895_v41 = vpop.f32.mrb[0].mxu1 }
 0x2d6   : > { %v722_v42 = vpop.f32.mrb[1].mxu1 }
 0x2d7   : > { %v224_v43 = vpop.f32.mrb[2].mxu1 }
 0x2d8   : > { %v723_v44 = vpop.f32.mrb[3].mxu1 }
 0x2dd   : > { %v284_v45 = vpop.f32.mrb[4].mxu1 }
 0x2de   : > { %v728_v46 = vpop.f32.mrb[5].mxu1  ;;  %v290_v47 = vsel %vm121_vm1, %v284_v45, -inf }
 0x2df   : > { %291 = vmax.xlane.f32.xlu1 %v290_v47  ;;  %v287_v48 = vpop.f32.mrb[6].mxu1 }
 0x2e0   : > { %v729_v49 = vpop.f32.mrb[7].mxu1 }
 0x2e5   : > { %v411_v50 = vpop.f32.mrb[8].mxu1 }
 0x2e6   : > { %v740_v51 = vpop.f32.mrb[9].mxu1  ;;  %v417_v52 = vsel %vm121_vm1, %v411_v50, -inf }
 0x2e7   : > { %418 = vmax.xlane.f32.xlu0 %v417_v52  ;;  %v414_v53 = vpop.f32.mrb[10].mxu1 }
 0x2e8   : > { %v741_v54 = vpop.f32.mrb[11].mxu1 }
 0x2ed   : > { %v538_v55 = vpop.f32.mrb[12].mxu1 }
 0x2ee   : > { %v752_v56 = vpop.f32.mrb[13].mxu1  ;;  %v544_v57 = vsel %vm121_vm1, %v538_v55, -inf }
 0x2ef   : > { %545 = vmax.xlane.f32.xlu0 %v544_v57  ;;  %v541_v58 = vpop.f32.mrb[14].mxu1 }
 0x2f0   : > { %v753_v59 = vpop.f32.mrb[15].mxu1  ;;  %427 = vrot.lane.b32.xlu1 %v865_v11, %s823_s21 }
 0x305   : > { %554 = vrot.lane.b32.xlu0 %v868_v15, %s824_s22 }
 0x36c   : > { %v292_v60 = vpop.xlane.xlu1 %291 }
 0x36d   : > { %v293_v61 = vsub.f32 %v284_v45, %v292_v60 }
 0x36f   : > { %v294_v62 = vmul.f32 1.442695, %v293_v61 }
 0x370   : > { %v428_v3 = vpop.permute.xlu1 %427 }
 0x371   : > { %790 = vpow2.f32 %v294_v62  ;;  %v433_v5 = vsel %vm183_vm2, %v428_v3, 0 }
 0x374   : > { %v419_v63 = vpop.xlane.xlu0 %418 }
 0x375   : > { %v420_v1 = vsub.f32 %v411_v50, %v419_v63 }
 0x377   : > { %v421_v2 = vmul.f32 1.442695, %v420_v1 }
 0x379   : > { %792 = vpow2.f32 %v421_v2 }
 0x37b   : > { %v791_v4 = vpop.eup %790 }
 0x37c   : > { %v546_v6 = vpop.xlane.xlu0 %545  ;;  %v296_v7 = vsel %vm121_vm1, %v791_v4, 0.0  ;;  %v299_v8 = vpack.c.bf16 %v791_v4, %v791_v4 }
 0x37d   : > { %v547_v9 = vsub.f32 %v538_v55, %v546_v6  ;;  %297 = vadd.xlane.f32.xlu0 %v296_v7 }
 0x37e   : > { %733 = vmatmul.mubr.msk.bf16.vlgmr.msra.gmra.mrb[4].mxu0 %vm121_vm1, %v299_v8 }
 0x37f   : > { %v548_v10 = vmul.f32 1.442695, %v547_v9  ;;  %743 = vmatpush3.bf16.msra.mxu0 %v433_v5  ;;  %744 = vmatprep.mubr.msk.bf16.mxu0 %vm813_vm0, %v812_v0 }
 0x380   : > { %754 = vmatprep.subr.bf16.mxu0 %v812_v0  ;;  %v555_v11 = vpop.permute.xlu0 %554 }
 0x381   : > { %794 = vpow2.f32 %v548_v10  ;;  %v560_v13 = vsel %vm183_vm2, %v555_v11, 0 }
 0x383   : > { %v793_v12 = vpop.eup %792 }
 0x384   : > { %v423_v14 = vsel %vm121_vm1, %v793_v12, 0.0  ;;  %v426_v15 = vpack.c.bf16 %v793_v12, %v793_v12 }
 0x385   : > { %424 = vadd.xlane.f32.xlu1 %v423_v14 }
 0x386   : > { %745 = vmatmul.mubr.msk.bf16.vlgmr.msra.gmra.mrb[8].mxu0 %vm121_vm1, %v426_v15 }
 0x387   : > { %755 = vmatpush3.bf16.msra.mxu0 %v560_v13  ;;  %756 = vmatprep.mubr.msk.bf16.mxu0 %vm813_vm0, %v812_v0 }
 0x38b   : > { %v795_v16 = vpop.eup %794 }
 0x38c   : > { %v550_v17 = vsel %vm121_vm1, %v795_v16, 0.0  ;;  %v553_v18 = vpack.c.bf16 %v795_v16, %v795_v16 }
 0x38d   : > { %551 = vadd.xlane.f32.xlu0 %v550_v17 }
 0x38e   : > { %757 = vmatmul.mubr.msk.bf16.vlgmr.msra.gmra.mrb[12].mxu0 %vm121_vm1, %v553_v18 }
 0x391   : > { %175 = vadd.xlane.f32.xlu0 %v174_v19 }
 0x40a   : > { %v298_v20 = vpop.xlane.xlu0 %297 }
 0x412   : > { %v425_v25 = vpop.xlane.xlu1 %424 }
 0x41a   : > { %v552_v21 = vpop.xlane.xlu0 %551 }
 0x41e   : > { %v176_v22 = vpop.xlane.xlu0 %175 }
 0x41f   : > { %796 = vrcp.f32 %v176_v22 }
 0x420   : > { %798 = vrcp.f32 %v298_v20 }
 0x421   : > { %800 = vrcp.f32 %v425_v25 }
 0x422   : > { %802 = vrcp.f32 %v552_v21 }
 0x429   : > { %v797_v23 = vpop.eup %796 }
 0x42a   : > { %v228_v24 = vmul.f32 %v797_v23, %v895_v41  ;;  %v799_v26 = vpop.eup %798 }
 0x42b   : > { %v801_v33 = vpop.eup %800 }
 0x42c   : > { %v229_v0 = vpack.c.bf16 %v228_v24, %v228_v24  ;;  %v803_v40 = vpop.eup %802 }
 0x42e   : > { %231 = vst.msk [vmem:[%s923_s25] sm:$0xf] %vm230_vm3, %v229_v0 }
 0x451   : > { %v342_v27 = vpop.f32.mrb[4].mxu0 }
 0x452   : > { %v349_v28 = vmul.f32 %v799_v26, %v342_v27  ;;  %v734_v29 = vpop.f32.mrb[5].mxu0 }
 0x453   : > { %v345_v30 = vpop.f32.mrb[6].mxu0 }
 0x454   : > { %v693_v31 = vpack.c.bf16 %v349_v28, %v349_v28  ;;  %v735_v32 = vpop.f32.mrb[7].mxu0 }
 0x456   : > { %354 = vrot.lane.b32.xlu0 %v693_v31, %s825_s26 }
 0x459   : > { %v469_v34 = vpop.f32.mrb[8].mxu0 }
 0x45a   : > { %v476_v35 = vmul.f32 %v801_v33, %v469_v34  ;;  %v746_v36 = vpop.f32.mrb[9].mxu0 }
 0x45b   : > { %v472_v37 = vpop.f32.mrb[10].mxu0 }
 0x45c   : > { %v694_v38 = vpack.c.bf16 %v476_v35, %v476_v35  ;;  %v747_v39 = vpop.f32.mrb[11].mxu0 }
 0x45e   : > { %481 = vrot.lane.b32.xlu1 %v694_v38, %s826_s27 }
 0x461   : > { %v596_v41 = vpop.f32.mrb[12].mxu0 }
 0x462   : > { %v603_v42 = vmul.f32 %v803_v40, %v596_v41  ;;  %v758_v43 = vpop.f32.mrb[13].mxu0 }
 0x463   : > { %v599_v44 = vpop.f32.mrb[14].mxu0 }
 0x464   : > { %v695_v45 = vpack.c.bf16 %v603_v42, %v603_v42  ;;  %v759_v46 = vpop.f32.mrb[15].mxu0 }
 0x466   : > { %608 = vrot.lane.b32.xlu0 %v695_v45, %s827_s28 }
 0x4c8   : > { %v355_v47 = vpop.permute.xlu0 %354 }
 0x4c9   : > { %358 = vst.msk [vmem:[%s923_s25] sm:$0xf] %vm357_vm4, %v355_v47 }
 0x4d0   : > { %v482_v48 = vpop.permute.xlu1 %481 }
 0x4d1   : > { %485 = vst.msk [vmem:[%s923_s25] sm:$0xf] %vm484_vm5, %v482_v48 }
 0x4d8   : > { %v609_v49 = vpop.permute.xlu0 %608 }
 0x4d9   : > { %612 = vst.msk [vmem:[%s923_s25] sm:$0xf] %vm611_vm6, %v609_v49 }
 0x4da PF: > { %s11_s6 = sadd.s32 1, %s810_s6  }
 0x4db   : > { %p8_p4 = scmp.ge.s32.totalorder %s11_s6, 4  }
 0x4dd   :  { %10 = sbr.rel (!%p8_p4) target bundleno = 1 (0x1), region = 54 }

// kernel: self_attention_forward.5
= control target key start
LH: loop header
LB: loop body
LE: loop exit
PB: predicated region body
PF: predicated region fallthrough
CT: control target
= control target key end

     0   :  { %v177_v1 = vmov 0.0   ;;  %vm37_vm0 = vcmask 261120   ;;  %vm178_vm1 = vmmov 0   ;;  %s231_s0 = inlined_call_operand.vmem [shape: bf16[16,32], index: 0, kind: input, shape index: {}]   ;;  %s232_s1 = inlined_call_operand.vmem [shape: bf16[32,32], index: 1, kind: input, shape index: {}]   ;;  %s233_s2 = inlined_call_operand.vmem [shape: f32[1,32], index: 2, kind: input, shape index: {}]   ;;  %s234_s3 = inlined_call_operand.hbm [shape: f32[16,32], index: 3, kind: output, shape index: {}]  }
   0x1   :  { %v150_v0 = vld [vmem:[%s232_s1] sm:$0xff]   ;;  %137 = vmatprep.subr.bf16.mxu0 %v177_v1  ;;  %141 = vmatprep.mubr.msk.bf16.mxu0 %vm178_vm1, %v177_v1 }
   0x2   :  { %v42_v2 = vsel %vm37_vm0, %v150_v0, 0 }
   0x3   :  { %138 = vmatpush3.bf16.xpose.msra.mxu0 %v42_v2 }
   0x4   :  { %8 = vsyncpa [#allocation3], 0  ;;  %139 = vmatprep.subr.bf16.mxu0 %v177_v1  ;;  %v151_v3 = vld [vmem:[%s232_s1 + $0x8] sm:$0xff]   ;;  %v152_v5 = vld [vmem:[%s231_s0] sm:$0xff]   ;;  %s179_s20 = smov [#allocation2]  }
   0x5   :  { %v45_v4 = vsel %vm37_vm0, %v151_v3, 0  ;;  %v133_v6 = vld [vmem:[%s233_s2] ss:$0 sm:$0xff]  ;;  %s118_s21 = sshll.u32 %s179_s20, 4  ;;  %s119_s21 = int_to_ptr.vmem [resolvable:$true] %s118_s21 }
   0x6   :  { %s153_s0 = scalar_lea.vmem %s119_s21, 256  ;;  %p158_p1 = scmp.lt.s32.totalorder %s119_s21, %s119_s21 }
   0x7   :  { %p154_p0 = scmp.ne.s32.totalorder %s119_s21, %s153_s0  ;;  %p159_p2 = scmp.lt.s32.totalorder %s153_s0, %s153_s0 }
   0x9   :  { %p160_p3 = por %p159_p2, %p158_p1 }
   0xb   :  { %140 = vmatpush3.bf16.xpose.msra.mxu0 %v45_v4  ;;  %p161_p4 = pnand %p160_p3, %p154_p0 }
  0x12   :  { %142 = vmatmul.mubr.msk.bf16.vlgmr.msra.gmra.mrb[0].mxu0 %vm37_vm0, %v152_v5 }
  0xe5   :  { %v81_v7 = vpop.f32.mrb[0].mxu0 }
  0xe6   :  { %v99_v8 = vadd.f32 %v133_v6, %v81_v7  ;;  %v143_v9 = vpop.f32.mrb[1].mxu0 }
  0xe7   :  { %v84_v10 = vpop.f32.mrb[2].mxu0 }
  0xe8   :  { %101 = vst.msk [vmem:[#allocation2] sm:$0xff] %vm37_vm0, %v99_v8  ;;  %v100_v11 = vadd.f32 %v133_v6, %v84_v10  ;;  %v144_v12 = vpop.f32.mrb[3].mxu0 }
  0xea   :  { %102 = vst.msk [vmem:[#allocation2 + $0x8] sm:$0xff] %vm37_vm0, %v100_v11 }
  0xeb   :  { %164 = shalt.err (!%p161_p4)
}
  0xec   :  { %s165_s22 = scalar_lea.hbm %s234_s3, 256 }
  0xed   :  { %p166_p5 = scmp.ne.s32.totalorder %s234_s3, %s165_s22  ;;  %p169_p6 = scmp.lt.u32.totalorder %s165_s22, %s234_s3 }
  0xef   :  { %p171_p7 = pnand %p169_p6, %p166_p5 }
  0xf1   :  { %174 = shalt.err (!%p171_p7)
}
  0xf2   :  { %s180_s27 = smov 128   ;;  %s181_s28 = smov 8  }
  0xf3   :  { %124 = dma.vmem_to_hbm [thread:$0]  %s119_s21, 256, %s234_s3, [#allocation3], %s180_s27, %s180_s27, %s181_s28  }
  0xf4   :  { %175 = dma.done.wait [#allocation3], 256  }
  0xf5   :  { %176 = vsyncadd [#allocation3], 4294967040 }
  0xf6   :  { %128 = vsyncpa [#allocation3], 1 }

</bundles_post_ra>
